<compile_context>
chip_gen: v7x
topology: tpu7x:2x2x1
jax: 0.10.0
libtpu: 0.0.40
codegen_flags: <defaults>
</compile_context>

<pallas_src>
import functools

import jax
import jax.numpy as jnp
from jax.experimental import pallas as pl
from jax.experimental.pallas import tpu as pltpu

LANE = 128
BF16_TILE_ROWS = 16  # bf16 packs 16 sublanes per vreg/tile
HID1 = 128           # fc1 out (100) padded to lane width
HID2 = 384           # fc2 out (300) padded to a lane multiple


def _round_up(x, m):
    return (x + m - 1) // m * m


def actor_kernel(x_ref, pa_ref, pb_ref, o_ref, *, s_pad):
    """Fused forward: tanh(relu(relu(x@w1+b1)@w2+b2)@w3+b3).

    Slab A (bf16, width 128): rows [0, s_pad)                -> w1 [s_pad, 128]
                              rows [s_pad, s_pad+384)        -> w3 [384, 128]
                              row   s_pad+384                -> b1 [1, 128]
                              row   s_pad+384+16             -> b3 [1, 128]
    Slab B (bf16, width 384): rows [0, 128)                  -> w2 [128, 384]
                              row   128                      -> b2 [1, 384]
    All section starts are multiples of 16 rows (bf16 tile) -> views, no copies.
    """
    w1 = pa_ref[pl.ds(0, s_pad), :]                                           # [s_pad, 128]
    w3 = pa_ref[pl.ds(s_pad, HID2), :]                                        # [384, 128]
    b1 = pa_ref[pl.ds(s_pad + HID2, 1), :].astype(jnp.float32)                # [1, 128]
    b3 = pa_ref[pl.ds(s_pad + HID2 + BF16_TILE_ROWS, 1), :].astype(jnp.float32)
    w2 = pb_ref[pl.ds(0, HID1), :]                                            # [128, 384]
    b2 = pb_ref[pl.ds(HID1, 1), :].astype(jnp.float32)                        # [1, 384]

    x = x_ref[...]                                                            # bf16 [Bblk, s_pad]

    h1 = jnp.dot(x, w1, preferred_element_type=jnp.float32) + b1
    h1 = jnp.maximum(h1, 0.0).astype(jnp.bfloat16)

    h2 = jnp.dot(h1, w2, preferred_element_type=jnp.float32) + b2
    h2 = jnp.maximum(h2, 0.0).astype(jnp.bfloat16)

    h3 = jnp.dot(h2, w3, preferred_element_type=jnp.float32) + b3
    o_ref[...] = jnp.tanh(h3).astype(o_ref.dtype)                             # bf16 [Bblk, 128]


def pack_actor_params(w1, b1, w2, b2, w3, b3):
    """Zero-pad to bf16-tile-aligned shapes, cast to bf16, pack into two slabs.

    Weights are [in, out] (transposed vs. PyTorch's nn.Linear), biases are [out].
    Zero padding is numerically exact through ReLU and the following matmuls.
    """
    state_dim = w1.shape[0]
    action_dim = w3.shape[1]
    assert action_dim <= LANE  # TODO(synk): generalize slab-A width for action_dim > 128
    s_pad = _round_up(max(state_dim, BF16_TILE_ROWS), BF16_TILE_ROWS)

    def pad2(a, rows, cols):
        buf = jnp.zeros((rows, cols), jnp.bfloat16)
        return buf.at[: a.shape[0], : a.shape[1]].set(a.astype(jnp.bfloat16))

    slab_a = jnp.concatenate(
        [pad2(w1, s_pad, HID1),
         pad2(w3, HID2, LANE),
         pad2(b1.reshape(1, -1), BF16_TILE_ROWS, HID1),
         pad2(b3.reshape(1, -1), BF16_TILE_ROWS, LANE)],
        axis=0)                                            # [s_pad + 416, 128]
    slab_b = jnp.concatenate(
        [pad2(w2, HID1, HID2),
         pad2(b2.reshape(1, -1), BF16_TILE_ROWS, HID2)],
        axis=0)                                            # [144, 384]
    return slab_a, slab_b, s_pad, state_dim, action_dim


def actor_forward(state, packed, *, max_block_b=512):
    """state: [B, state_dim] f32 -> [B, action_dim] f32."""
    slab_a, slab_b, s_pad, state_dim, action_dim = packed
    B = state.shape[0]

    # Pad batch only to the bf16 sublane tile (16 rows), NOT to a block multiple.
    b_pad = _round_up(max(B, BF16_TILE_ROWS), BF16_TILE_ROWS)
    # >=2 grid steps when there is enough work (v7x: both TensorCores), capped
    # so v5e/v6e still get large blocks that amortize per-step overhead.
    block_b = min(max_block_b,
                  max(BF16_TILE_ROWS, _round_up(pl.cdiv(b_pad, 2), BF16_TILE_ROWS)))
    n_blocks = pl.cdiv(b_pad, block_b)
    grid = (n_blocks,)

    # Padded bf16 activation slab. Feature-dim padding is zeros (exact); padded
    # batch rows are never read back.
    x = jnp.zeros((b_pad, s_pad), jnp.bfloat16).at[:B, :state_dim].set(
        state.astype(jnp.bfloat16))

    flops = 2 * b_pad * (s_pad * HID1 + HID1 * HID2 + HID2 * LANE)
    bytes_accessed = (x.size * 2 + slab_a.size * 2 + slab_b.size * 2
                      + b_pad * LANE * 2)

    out = pl.pallas_call(
        functools.partial(actor_kernel, s_pad=s_pad),
        out_shape=jax.ShapeDtypeStruct((b_pad, LANE), jnp.bfloat16),
        grid_spec=pltpu.PrefetchScalarGridSpec(
            num_scalar_prefetch=0,
            grid=grid,
            in_specs=[
                pl.BlockSpec((block_b, s_pad), lambda i: (i, 0)),   # activations
                pl.BlockSpec(slab_a.shape, lambda i: (0, 0)),       # param slab A (resident)
                pl.BlockSpec(slab_b.shape, lambda i: (0, 0)),       # param slab B (resident)
            ],
            out_specs=pl.BlockSpec((block_b, LANE), lambda i: (i, 0)),
        ),
        compiler_params=pltpu.CompilerParams(
            dimension_semantics=("parallel",)),
        cost_estimate=pl.CostEstimate(
            flops=flops,
            transcendentals=b_pad * LANE,
            bytes_accessed=bytes_accessed),
    )(x, slab_a, slab_b)

    return out[:B, :action_dim].astype(jnp.float32)


def init_actor_params(key, state_dim, action_dim):
    """PyTorch nn.Linear-style init (U[-1/sqrt(fan_in), 1/sqrt(fan_in)])."""
    dims = [(state_dim, 100), (100, 300), (300, action_dim)]
    params = []
    for fan_in, fan_out in dims:
        key, kw, kb = jax.random.split(key, 3)
        bound = 1.0 / jnp.sqrt(jnp.float32(fan_in))
        w = jax.random.uniform(kw, (fan_in, fan_out), jnp.float32, -bound, bound)
        b = jax.random.uniform(kb, (fan_out,), jnp.float32, -bound, bound)
        params += [w, b]
    return tuple(params)


def actor_reference(state, params):
    """Pure-JAX f32 reference of the PyTorch forward."""
    w1, b1, w2, b2, w3, b3 = params
    h1 = jnp.maximum(state @ w1 + b1, 0.0)
    h2 = jnp.maximum(h1 @ w2 + b2, 0.0)
    return jnp.tanh(h2 @ w3 + b3)


if __name__ == "__main__":
    state_dim = 32
    action_dim = 8
    batch = 2

    key = jax.random.PRNGKey(0)
    key, kx = jax.random.split(key)
    state = jax.random.normal(kx, (batch, state_dim), jnp.float32)
    params = init_actor_params(key, state_dim, action_dim)

    packed = pack_actor_params(*params)
    out = actor_forward(state, packed)
    out = jax.block_until_ready(out)

    # Correctness: shape, tanh range, and closeness to the f32 reference
    # (bf16 weights/activations/output -> loose tolerance).
    ref = actor_reference(state, params)
    assert out.shape == (batch, action_dim)
    assert bool(jnp.all(jnp.abs(out) <= 1.0))
    assert bool(jnp.allclose(out, ref, atol=5e-2, rtol=5e-2)), (
        f"max abs err {float(jnp.max(jnp.abs(out - ref)))}")
    print("KERNEL_OK")
</pallas_src>

<mosaic_0001>
module attributes {stable_mosaic.version = 11 : i64} {
  func.func @actor_kernel(%arg0: i32, %arg1: memref<16x32xbf16, #tpu.memory_space<vmem>>, %arg2: memref<448x128xbf16, #tpu.memory_space<vmem>>, %arg3: memref<144x384xbf16, #tpu.memory_space<vmem>>, %arg4: memref<16x128xbf16, #tpu.memory_space<vmem>>) attributes {dimension_semantics = [#tpu.dimension_semantics<parallel>], iteration_bounds = array<i64: 1>, scalar_prefetch = 0 : i64, scratch_operands = 0 : i64, tpu.core_type = #tpu.core_type<tc>, window_params = [{transform_indices = @transform_0, window_bounds = array<i64: 16, 32>}, {pipeline_mode = #tpu.pipeline_mode<synchronous>, transform_indices = @transform_1, window_bounds = array<i64: 448, 128>}, {pipeline_mode = #tpu.pipeline_mode<synchronous>, transform_indices = @transform_2, window_bounds = array<i64: 144, 384>}, {transform_indices = @transform_3, window_bounds = array<i64: 16, 128>}]} {
    %c0 = arith.constant 0 : index
    %c0_0 = arith.constant 0 : index
    %0 = vector.load %arg2[%c0, %c0_0] : memref<448x128xbf16, #tpu.memory_space<vmem>>, vector<32x128xbf16>
    %c32 = arith.constant 32 : index
    %c0_1 = arith.constant 0 : index
    %1 = vector.load %arg2[%c32, %c0_1] : memref<448x128xbf16, #tpu.memory_space<vmem>>, vector<384x128xbf16>
    %c416 = arith.constant 416 : index
    %c0_2 = arith.constant 0 : index
    %2 = vector.load %arg2[%c416, %c0_2] : memref<448x128xbf16, #tpu.memory_space<vmem>>, vector<1x128xbf16>
    %3 = arith.extf %2 : vector<1x128xbf16> to vector<1x128xf32>
    %c432 = arith.constant 432 : index
    %c0_3 = arith.constant 0 : index
    %4 = vector.load %arg2[%c432, %c0_3] : memref<448x128xbf16, #tpu.memory_space<vmem>>, vector<1x128xbf16>
    %5 = arith.extf %4 : vector<1x128xbf16> to vector<1x128xf32>
    %c0_4 = arith.constant 0 : index
    %c0_5 = arith.constant 0 : index
    %6 = vector.load %arg3[%c0_4, %c0_5] : memref<144x384xbf16, #tpu.memory_space<vmem>>, vector<128x384xbf16>
    %c128 = arith.constant 128 : index
    %c0_6 = arith.constant 0 : index
    %7 = vector.load %arg3[%c128, %c0_6] : memref<144x384xbf16, #tpu.memory_space<vmem>>, vector<1x384xbf16>
    %8 = arith.extf %7 : vector<1x384xbf16> to vector<1x384xf32>
    %c0_7 = arith.constant 0 : index
    %c0_8 = arith.constant 0 : index
    %9 = vector.load %arg1[%c0_7, %c0_8] : memref<16x32xbf16, #tpu.memory_space<vmem>>, vector<16x32xbf16>
    %cst = arith.constant dense<0.000000e+00> : vector<16x128xf32>
    %10 = tpu.matmul %9, %0, %cst {dimension_numbers = #tpu.dot_dimension_numbers<[1], [0], [0], [1], [0, 0, 1, 1], [], []>} : vector<16x32xbf16>, vector<32x128xbf16>, vector<16x128xf32> -> vector<16x128xf32>
    %11 = vector.broadcast %3 : vector<1x128xf32> to vector<16x128xf32>
    %12 = arith.addf %10, %11 : vector<16x128xf32>
    %cst_9 = arith.constant 0.000000e+00 : f32
    %13 = vector.broadcast %cst_9 : f32 to vector<16x128xf32>
    %14 = arith.maximumf %12, %13 : vector<16x128xf32>
    %15 = arith.truncf %14 : vector<16x128xf32> to vector<16x128xbf16>
    %cst_10 = arith.constant dense<0.000000e+00> : vector<16x384xf32>
    %16 = tpu.matmul %15, %6, %cst_10 {dimension_numbers = #tpu.dot_dimension_numbers<[1], [0], [0], [1], [0, 0, 1, 1], [], []>} : vector<16x128xbf16>, vector<128x384xbf16>, vector<16x384xf32> -> vector<16x384xf32>
    %17 = vector.broadcast %8 : vector<1x384xf32> to vector<16x384xf32>
    %18 = arith.addf %16, %17 : vector<16x384xf32>
    %cst_11 = arith.constant 0.000000e+00 : f32
    %19 = vector.broadcast %cst_11 : f32 to vector<16x384xf32>
    %20 = arith.maximumf %18, %19 : vector<16x384xf32>
    %21 = arith.truncf %20 : vector<16x384xf32> to vector<16x384xbf16>
    %cst_12 = arith.constant dense<0.000000e+00> : vector<16x128xf32>
    %22 = tpu.matmul %21, %1, %cst_12 {dimension_numbers = #tpu.dot_dimension_numbers<[1], [0], [0], [1], [0, 0, 1, 1], [], []>} : vector<16x384xbf16>, vector<384x128xbf16>, vector<16x128xf32> -> vector<16x128xf32>
    %23 = vector.broadcast %5 : vector<1x128xf32> to vector<16x128xf32>
    %24 = arith.addf %22, %23 : vector<16x128xf32>
    %25 = math.tanh %24 : vector<16x128xf32>
    %26 = arith.truncf %25 : vector<16x128xf32> to vector<16x128xbf16>
    %c0_13 = arith.constant 0 : index
    %c0_14 = arith.constant 0 : index
    %27 = vector.load %arg4[%c0_13, %c0_14] : memref<16x128xbf16, #tpu.memory_space<vmem>>, vector<16x128xbf16>
    tpu.vector_store %arg4[%c0_13, %c0_14], %26 {strides = array<i32>} : memref<16x128xbf16, #tpu.memory_space<vmem>>, vector<16x128xbf16>,
    return
  }
  func.func @transform_0(%arg0: i32) -> (i32, i32) {
    %c0_i32 = arith.constant 0 : i32
    %c0_i32_0 = arith.constant 0 : i32
    return %arg0, %c0_i32 : i32, i32
  }
  func.func @transform_1(%arg0: i32) -> (i32, i32) {
    %c0_i32 = arith.constant 0 : i32
    %c0_i32_0 = arith.constant 0 : i32
    %c0_i32_1 = arith.constant 0 : i32
    return %c0_i32, %c0_i32_0 : i32, i32
  }
  func.func @transform_2(%arg0: i32) -> (i32, i32) {
    %c0_i32 = arith.constant 0 : i32
    %c0_i32_0 = arith.constant 0 : i32
    %c0_i32_1 = arith.constant 0 : i32
    return %c0_i32, %c0_i32_0 : i32, i32
  }
  func.func @transform_3(%arg0: i32) -> (i32, i32) {
    %c0_i32 = arith.constant 0 : i32
    %c0_i32_0 = arith.constant 0 : i32
    return %arg0, %c0_i32 : i32, i32
  }
}

</mosaic_0001>

<bundles_post_ra>
// kernel: tpu_custom_call.1
= control target key start
LH: loop header
LB: loop body
LE: loop exit
PB: predicated region body
PF: predicated region fallthrough
CT: control target
= control target key end

     0   :  { %8 = vsyncpa [#allocation3], 0  ;;  %s1160_s0 = inlined_call_operand.hbm [shape: bf16[16,32], index: 0, kind: input, shape index: {}]   ;;  %s1161_s1 = inlined_call_operand.hbm [shape: bf16[448,128], index: 1, kind: input, shape index: {}]   ;;  %s1162_s2 = inlined_call_operand.hbm [shape: bf16[144,384], index: 2, kind: input, shape index: {}]   ;;  %s1163_s3 = inlined_call_operand.hbm [shape: bf16[16,128], index: 3, kind: output, shape index: {}]  }
   0x1   :  { %9 = vsyncpa [#allocation6], 0 }
   0x2   :  { %10 = vsyncpa [#allocation4], 0  ;;  %s1034_s12 = smov [#allocation5]   ;;  %s1035_s14 = smov [#allocation2]  }
   0x3   :  { %s28_s13 = sshll.u32 %s1034_s12, 4  ;;  %s16_s15 = sshll.u32 %s1035_s14, 4  ;;  %s29_s13 = int_to_ptr.vmem [resolvable:$true] %s28_s13  ;;  %s1065_s15 = int_to_ptr.vmem [resolvable:$true] %s16_s15 }
   0x4   :  { %s940_s18 = scalar_lea.hbm %s1161_s1, 3584 }
   0x5   :  { %p941_p0 = scmp.ne.s32.totalorder %s1161_s1, %s940_s18  ;;  %p944_p1 = scmp.lt.u32.totalorder %s940_s18, %s1161_s1 }
   0x7   :  { %p946_p2 = pnand %p944_p1, %p941_p0 }
   0x9   :  { %949 = shalt.err (!%p946_p2)
}
   0xa   :  { %s950_s23 = scalar_lea.vmem %s29_s13, 3584  ;;  %p955_p4 = scmp.lt.s32.totalorder %s29_s13, %s29_s13 }
   0xb   :  { %p951_p3 = scmp.ne.s32.totalorder %s29_s13, %s950_s23  ;;  %p956_p5 = scmp.lt.s32.totalorder %s950_s23, %s950_s23 }
   0xd   :  { %p957_p6 = por %p956_p5, %p955_p4 }
   0xf   :  { %p958_p7 = pnand %p957_p6, %p951_p3 }
  0x11   :  { %961 = shalt.err (!%p958_p7)
}
  0x12   :  { %s1036_s24 = smov 64   ;;  %s1037_s25 = smov 4  }
  0x13   :  { %34 = dma.hbm_to_vmem [thread:$0]  %s1161_s1, 3584, %s29_s13, [#allocation6], %s1036_s24, %s1036_s24, %s1037_s25  }
  0x14   :  { %s962_s30 = scalar_lea.hbm %s1160_s0, 128 }
  0x15   :  { %p963_p8 = scmp.ne.s32.totalorder %s1160_s0, %s962_s30  ;;  %p966_p9 = scmp.lt.u32.totalorder %s962_s30, %s1160_s0 }
  0x17   :  { %p968_p10 = pnand %p966_p9, %p963_p8 }
  0x19   :  { %971 = shalt.err (!%p968_p10)
}
  0x1a   :  { %s972_s8 = scalar_lea.vmem %s1065_s15, 128  ;;  %p977_p12 = scmp.lt.s32.totalorder %s1065_s15, %s1065_s15 }
  0x1b   :  { %p973_p11 = scmp.ne.s32.totalorder %s1065_s15, %s972_s8  ;;  %p978_p13 = scmp.lt.s32.totalorder %s972_s8, %s972_s8 }
  0x1d   :  { %p979_p0 = por %p978_p13, %p977_p12 }
  0x1f   :  { %p980_p1 = pnand %p979_p0, %p973_p11 }
  0x21   :  { %983 = shalt.err (!%p980_p1)
}
  0x22   :  { %22 = dma.hbm_to_vmem [thread:$0]  %s1160_s0, 128, %s1065_s15, [#allocation3], %s1036_s24, %s1036_s24, %s1037_s25  }
  0x23   :  { %s1038_s10 = smov [#allocation7]   ;;  %s984_s14 = scalar_lea.hbm %s1162_s2, 3456 }
  0x24   :  { %s40_s11 = sshll.u32 %s1038_s10, 4  ;;  %p985_p2 = scmp.ne.s32.totalorder %s1162_s2, %s984_s14  ;;  %s41_s11 = int_to_ptr.vmem [resolvable:$true] %s40_s11 }
  0x25   :  { %p988_p3 = scmp.lt.u32.totalorder %s984_s14, %s1162_s2 }
  0x27   :  { %p990_p4 = pnand %p988_p3, %p985_p2 }
  0x29   :  { %993 = shalt.err (!%p990_p4)
}
  0x2a   :  { %s994_s20 = scalar_lea.vmem %s41_s11, 3456  ;;  %p999_p6 = scmp.lt.s32.totalorder %s41_s11, %s41_s11 }
  0x2b   :  { %p995_p5 = scmp.ne.s32.totalorder %s41_s11, %s994_s20  ;;  %p1000_p7 = scmp.lt.s32.totalorder %s994_s20, %s994_s20 }
  0x2d   :  { %p1001_p8 = por %p1000_p7, %p999_p6 }
  0x2f   :  { %p1002_p9 = pnand %p1001_p8, %p995_p5 }
  0x31   :  { %1005 = shalt.err (!%p1002_p9)
}
  0x32   :  { %s1039_s0 = smov 192   ;;  %s1040_s15 = smov 12  }
  0x33   :  { %46 = dma.hbm_to_vmem [thread:$0]  %s1162_s2, 3456, %s41_s11, [#allocation6], %s1039_s0, %s1039_s0, %s1040_s15  }
  0x34   :  { %1028 = dma.done.wait [#allocation3], 128  }
  0x35   :  { %1029 = vsyncadd [#allocation3], 4294967168 }
  0x36   :  { %1030 = dma.done.wait [#allocation6], 7040  }
  0x37   :  { %1031 = vsyncadd [#allocation6], 4294960256  ;;  %v1041_v0 = vmov 0.0   ;;  %vm1042_vm0 = vmmov 0   ;;  %v877_v1 = vld [vmem:[#allocation5] sm:$0xff]   ;;  %v878_v2 = vld [vmem:[#allocation5 + $0x8] sm:$0xff]   ;;  %v152_v30 = vlaneseq }
  0x38   :  { %818 = vmatprep.subr.bf16.mxu0 %v1041_v0  ;;  %822 = vmatprep.mubr.msk.bf16.mxu0 %vm1042_vm0, %v1041_v0  ;;  %v879_v3 = vld [vmem:[#allocation2] sm:$0xff]   ;;  %v880_v4 = vld [vmem:[#allocation7 + $0x4] ss:$12 sps:$4 sm:$0xff]   ;;  %v882_v5 = vld [vmem:[#allocation7] ss:$12 sps:$4 sm:$0xff]   ;;  %vm173_vm1 = vcmask 261120  }
  0x39   :  { %819 = vmatpush3.bf16.msra.mxu0 %v877_v1  ;;  %361 = vmatprep.subr.bf16.mxu1 %v880_v4  ;;  %v883_v6 = vld [vmem:[#allocation7 + $0x8] ss:$12 sps:$4 sm:$0xff]   ;;  %v886_v8 = vld [vmem:[#allocation7 + $0x18] ss:$12 sps:$4 sm:$0xff]   ;;  %v887_v10 = vld [vmem:[#allocation7 + $0x20] ss:$12 sps:$4 sm:$0xff]  }
  0x3a   :  { %820 = vmatprep.subr.bf16.mxu0 %v1041_v0  ;;  %362 = vmatpush1.bf16.msra.mxu1 %v882_v5  ;;  %v884_v7 = vld [vmem:[#allocation7 + $0x1c] ss:$12 sps:$4 sm:$0xff]   ;;  %v888_v9 = vld [vmem:[#allocation7 + $0x34] ss:$12 sps:$4 sm:$0xff]   ;;  %v892_v12 = vld [vmem:[#allocation7 + $0x4c] ss:$12 sps:$4 sm:$0xff]  }
  0x3b   :  { %363 = vmatprep.subr.bf16.mxu1 %v884_v7  ;;  %v890_v11 = vld [vmem:[#allocation7 + $0x30] ss:$12 sps:$4 sm:$0xff]   ;;  %v891_v13 = vld [vmem:[#allocation7 + $0x38] ss:$12 sps:$4 sm:$0xff]   ;;  %v894_v14 = vld [vmem:[#allocation7 + $0x48] ss:$12 sps:$4 sm:$0xff]  }
  0x3c   :  { %v896_v15 = vld [vmem:[#allocation7 + $0x64] ss:$12 sps:$4 sm:$0xff]   ;;  %v898_v17 = vld [vmem:[#allocation7 + $0x60] ss:$12 sps:$4 sm:$0xff]   ;;  %v900_v18 = vld [vmem:[#allocation7 + $0x7c] ss:$12 sps:$4 sm:$0xff]  }
  0x3d   :  { %821 = vmatpush3.bf16.msra.mxu0 %v878_v2  ;;  %v895_v16 = vld [vmem:[#allocation7 + $0x50] ss:$12 sps:$4 sm:$0xff]   ;;  %v899_v19 = vld [vmem:[#allocation7 + $0x68] ss:$12 sps:$4 sm:$0xff]   ;;  %v902_v20 = vld [vmem:[#allocation7 + $0x78] ss:$12 sps:$4 sm:$0xff]  }
  0x3e   :  { %826 = vmatprep.subr.bf16.mxu0 %v1041_v0  ;;  %364 = vmatpush1.bf16.msra.mxu1 %v886_v8  ;;  %v903_v21 = vld [vmem:[#allocation7 + $0x80] ss:$12 sps:$4 sm:$0xff]   ;;  %v906_v23 = vld [vmem:[#allocation7 + $0x90] ss:$12 sps:$4 sm:$0xff]   ;;  %v907_v24 = vld [vmem:[#allocation7 + $0x98] ss:$12 sps:$4 sm:$0xff]  }
  0x3f   :  { %365 = vmatprep.subr.bf16.mxu1 %v888_v9  ;;  %v904_v22 = vld [vmem:[#allocation7 + $0x94] ss:$12 sps:$4 sm:$0xff]   ;;  %v908_v25 = vld [vmem:[#allocation7 + $0xac] ss:$12 sps:$4 sm:$0xff]   ;;  %v911_v27 = vld [vmem:[#allocation7 + $0xb0] ss:$12 sps:$4 sm:$0xff]  }
  0x40   :  { %823 = vmatmul.mubr.msk.bf16.vlgmr.msra.gmra.mrb[0].mxu0 %vm173_vm1, %v879_v3  ;;  %v910_v26 = vld [vmem:[#allocation7 + $0xa8] ss:$12 sps:$4 sm:$0xff]   ;;  %v1043_v28 = vmov 0   ;;  %v153_v31 = vshrl.u32 %v152_v30, 7  ;;  %v109_v32 = vld [vmem:[#allocation5 + $0xd0] sm:$0x1] }
  0x41   :  { %827 = vmatpush3.bf16.msra.mxu0 %v883_v6  ;;  %842 = vmatprep.mubr.msk.bf16.mxu0 %vm1042_vm0, %v1041_v0  ;;  %v913_v29 = vld [vmem:[#allocation5 + $0x50] sm:$0xff]   ;;  %v110_v33 = vunpack.c.l.bf16 %v109_v32  ;;  %v916_v47 = vld [vmem:[#allocation5 + $0x58] sm:$0xff]   ;;  %v919_v50 = vld [vmem:[#allocation5 + $0x60] sm:$0xff]   ;;  %s1044_s2 = smov [#allocation8]  }
  0x42   :  { %828 = vmatprep.subr.bf16.mxu0 %v1041_v0  ;;  %366 = vmatpush1.bf16.msra.mxu1 %v890_v11  ;;  %v1129_v34 = vsub.s32 0, %v153_v31  ;;  %v912_v44 = vld [vmem:[#allocation5 + $0x90] sm:$0xff]   ;;  %v915_v48 = vld [vmem:[#allocation5 + $0x98] sm:$0xff]   ;;  %v918_v51 = vld [vmem:[#allocation5 + $0xa0] sm:$0xff]   ;;  %s701_s23 = sshll.u32 %s1044_s2, 4  ;;  %s702_s23 = int_to_ptr.vmem [resolvable:$true] %s701_s23 }
  0x43   :  { %367 = vmatprep.subr.bf16.mxu1 %v892_v12  ;;  %393 = vmatprep.mubr.bf16.mxu1 %v1043_v28  ;;  %v914_v45 = vld [vmem:[#allocation5 + $0x10] sm:$0xff]   ;;  %v917_v49 = vld [vmem:[#allocation5 + $0x18] sm:$0xff]   ;;  %v920_v52 = vld [vmem:[#allocation5 + $0x20] sm:$0xff]   ;;  %s1006_s26 = scalar_lea.vmem %s702_s23, 128  ;;  %p1011_p11 = scmp.lt.s32.totalorder %s702_s23, %s702_s23 }
  0x44   :  { %v155_v35 = vrot.slane %v110_v33, %v1129_v34  ;;  %v922_v53 = vld [vmem:[#allocation5 + $0x68] sm:$0xff]   ;;  %v925_v56 = vld [vmem:[#allocation5 + $0x70] sm:$0xff]   ;;  %v928_v59 = vld [vmem:[#allocation5 + $0x78] sm:$0xff]   ;;  %p1007_p10 = scmp.ne.s32.totalorder %s702_s23, %s1006_s26  ;;  %p1012_p12 = scmp.lt.s32.totalorder %s1006_s26, %s1006_s26 }
  0x45   :  { %829 = vmatpush3.bf16.msra.mxu0 %v887_v10  ;;  %v921_v54 = vld [vmem:[#allocation5 + $0xa8] sm:$0xff]   ;;  %v924_v57 = vld [vmem:[#allocation5 + $0xb0] sm:$0xff]   ;;  %v927_v60 = vld [vmem:[#allocation5 + $0xb8] sm:$0xff]  }
  0x46   :  { %830 = vmatprep.subr.bf16.mxu0 %v1041_v0  ;;  %368 = vmatpush1.bf16.msra.mxu1 %v894_v14  ;;  %v923_v55 = vld [vmem:[#allocation5 + $0x28] sm:$0xff]   ;;  %v926_v58 = vld [vmem:[#allocation5 + $0x30] sm:$0xff]   ;;  %v929_v61 = vld [vmem:[#allocation5 + $0x38] sm:$0xff]   ;;  %p1013_p13 = por %p1012_p12, %p1011_p11 }
  0x47   :  { %369 = vmatprep.subr.bf16.mxu1 %v896_v15  ;;  %v930_v62 = vld [vmem:[#allocation5 + $0xc0] sm:$0xff]   ;;  %v933_v2 = vld [vmem:[#allocation5 + $0xc8] sm:$0xff]  }
  0x48   :  { %v931_v63 = vld [vmem:[#allocation5 + $0x80] sm:$0xff]   ;;  %v934_v3 = vld [vmem:[#allocation5 + $0x88] sm:$0xff]   ;;  %p1014_p0 = pnand %p1013_p13, %p1007_p10 }
  0x49   :  { %831 = vmatpush3.bf16.msra.mxu0 %v891_v13  ;;  %v932_v1 = vld [vmem:[#allocation5 + $0x40] sm:$0xff]   ;;  %v935_v4 = vld [vmem:[#allocation5 + $0x48] sm:$0xff]  }
  0x4a   :  { %832 = vmatprep.subr.bf16.mxu0 %v1041_v0  ;;  %370 = vmatpush1.bf16.msra.mxu1 %v898_v17  ;;  %v145_v5 = vld [vmem:[#allocation7 + $0xc0] sm:$0x11]  ;;  %v146_v6 = vld [vmem:[#allocation7 + $0xc8] sm:$0x1] }
  0x4b   :  { %371 = vmatprep.subr.bf16.mxu1 %v900_v18  ;;  %v147_v7 = vunpack.c.l.bf16 %v145_v5  ;;  %v149_v8 = vunpack.c.l.bf16 %v146_v6  ;;  %v148_v9 = vunpack.c.h.bf16 %v145_v5 }
  0x4d   :  { %833 = vmatpush3.bf16.msra.mxu0 %v895_v16  ;;  %v224_v10 = vrot.slane %v147_v7, %v1129_v34  ;;  %v232_v11 = vrot.slane %v149_v8, %v1129_v34  ;;  %v228_v12 = vrot.slane %v148_v9, %v1129_v34 }
  0x4e   :  { %834 = vmatprep.subr.bf16.mxu0 %v1041_v0  ;;  %372 = vmatpush1.bf16.msra.mxu1 %v902_v20 }
  0x4f   :  { %373 = vmatprep.subr.bf16.mxu1 %v904_v22 }
  0x51   :  { %835 = vmatpush3.bf16.msra.mxu0 %v899_v19 }
  0x52   :  { %836 = vmatprep.subr.bf16.mxu0 %v1041_v0  ;;  %374 = vmatpush1.bf16.msra.mxu1 %v906_v23 }
  0x53   :  { %375 = vmatprep.subr.bf16.mxu1 %v908_v25 }
  0x55   :  { %837 = vmatpush3.bf16.msra.mxu0 %v903_v21 }
  0x56   :  { %838 = vmatprep.subr.bf16.mxu0 %v1041_v0  ;;  %376 = vmatpush1.bf16.msra.mxu1 %v910_v26 }
  0x57   :  { %787 = vmatprep.subr.bf16.mxu1 %v913_v29 }
  0x59   :  { %839 = vmatpush3.bf16.msra.mxu0 %v907_v24 }
  0x5a   :  { %840 = vmatprep.subr.bf16.mxu0 %v1041_v0 }
  0x5d   :  { %841 = vmatpush3.bf16.msra.mxu0 %v911_v27 }
  0x5e   :  { %846 = vmatprep.subr.bf16.mxu0 %v1041_v0 }
 0x113   :  { %v211_v36 = vpop.f32.mrb[0].mxu0 }
 0x114   :  { %v212_v37 = vadd.f32 %v211_v36, %v155_v35  ;;  %v824_v38 = vpop.f32.mrb[1].mxu0  ;;  %v111_v36 = vld [vmem:[#allocation5 + $0xd8] sm:$0x1] }
 0x115   :  { %v214_v39 = vpop.f32.mrb[2].mxu0 }
 0x116   :  { %v215_v40 = vadd.f32 %v214_v39, %v155_v35  ;;  %v825_v41 = vpop.f32.mrb[3].mxu0  ;;  %v218_v42 = vmax.f32 %v212_v37, 0.0  ;;  %v112_v37 = vunpack.c.l.bf16 %v111_v36 }
 0x118   :  { %v219_v43 = vmax.f32 %v215_v40, 0.0 }
 0x11a   :  { %v220_v46 = vpack.c.bf16 %v219_v43, %v218_v42  ;;  %v457_v42 = vrot.slane %v112_v37, %v1129_v34 }
 0x11c   :  { %394 = vmatmul.mubr.bf16.vlgmr.msra.gmra.mrb[0].mxu1 %v220_v46  ;;  %843 = vmatmul.mubr.bf16.vlgmr.msra.gmra.mrb[4].mxu0 %v220_v46 }
 0x11d   :  { %847 = vmatpush3.bf16.msra.mxu0 %v912_v44  ;;  %788 = vmatpush3.bf16.msra.mxu1 %v914_v45 }
 0x11e   :  { %848 = vmatprep.subr.bf16.mxu0 %v1041_v0  ;;  %789 = vmatprep.subr.bf16.mxu1 %v916_v47 }
 0x11f   :  { %862 = vmatprep.mubr.msk.bf16.mxu0 %vm1042_vm0, %v1041_v0 }
 0x121   :  { %849 = vmatpush3.bf16.msra.mxu0 %v915_v48  ;;  %790 = vmatpush3.bf16.msra.mxu1 %v917_v49 }
 0x122   :  { %850 = vmatprep.subr.bf16.mxu0 %v1041_v0  ;;  %791 = vmatprep.subr.bf16.mxu1 %v919_v50 }
 0x125   :  { %851 = vmatpush3.bf16.msra.mxu0 %v918_v51  ;;  %792 = vmatpush3.bf16.msra.mxu1 %v920_v52 }
 0x126   :  { %852 = vmatprep.subr.bf16.mxu0 %v1041_v0  ;;  %793 = vmatprep.subr.bf16.mxu1 %v922_v53 }
 0x129   :  { %853 = vmatpush3.bf16.msra.mxu0 %v921_v54  ;;  %794 = vmatpush3.bf16.msra.mxu1 %v923_v55 }
 0x12a   :  { %854 = vmatprep.subr.bf16.mxu0 %v1041_v0  ;;  %795 = vmatprep.subr.bf16.mxu1 %v925_v56 }
 0x12d   :  { %855 = vmatpush3.bf16.msra.mxu0 %v924_v57  ;;  %796 = vmatpush3.bf16.msra.mxu1 %v926_v58 }
 0x12e   :  { %856 = vmatprep.subr.bf16.mxu0 %v1041_v0  ;;  %797 = vmatprep.subr.bf16.mxu1 %v928_v59 }
 0x131   :  { %857 = vmatpush3.bf16.msra.mxu0 %v927_v60  ;;  %798 = vmatpush3.bf16.msra.mxu1 %v929_v61 }
 0x132   :  { %858 = vmatprep.subr.bf16.mxu0 %v1041_v0  ;;  %799 = vmatprep.subr.bf16.mxu1 %v931_v63 }
 0x135   :  { %859 = vmatpush3.bf16.msra.mxu0 %v930_v62  ;;  %800 = vmatpush3.bf16.msra.mxu1 %v932_v1 }
 0x136   :  { %860 = vmatprep.subr.bf16.mxu0 %v1041_v0  ;;  %801 = vmatprep.subr.bf16.mxu1 %v934_v3 }
 0x139   :  { %861 = vmatpush3.bf16.msra.mxu0 %v933_v2  ;;  %802 = vmatpush3.bf16.msra.mxu1 %v935_v4 }
 0x1ef   :  { %v395_v13 = vpop.f32.mrb[0].mxu1  ;;  %v438_v0 = vpop.f32.mrb[4].mxu0 }
 0x1f0   :  { %v396_v14 = vadd.f32 %v395_v13, %v224_v10  ;;  %v439_v15 = vadd.f32 %v438_v0, %v232_v11  ;;  %v397_v16 = vpop.f32.mrb[1].mxu1  ;;  %v844_v17 = vpop.f32.mrb[5].mxu0 }
 0x1f1   :  { %v398_v18 = vadd.f32 %v397_v16, %v228_v12  ;;  %v399_v19 = vpop.f32.mrb[2].mxu1  ;;  %v441_v20 = vpop.f32.mrb[6].mxu0 }
 0x1f2   :  { %v400_v21 = vadd.f32 %v399_v19, %v224_v10  ;;  %v442_v22 = vadd.f32 %v441_v20, %v232_v11  ;;  %v401_v23 = vpop.f32.mrb[3].mxu1  ;;  %v845_v24 = vpop.f32.mrb[7].mxu0  ;;  %v445_v26 = vmax.f32 %v396_v14, 0.0  ;;  %v447_v27 = vmax.f32 %v439_v15, 0.0 }
 0x1f3   :  { %v402_v25 = vadd.f32 %v401_v23, %v228_v12  ;;  %v446_v30 = vmax.f32 %v398_v18, 0.0 }
 0x1f4   :  { %v448_v28 = vmax.f32 %v400_v21, 0.0  ;;  %v450_v29 = vmax.f32 %v442_v22, 0.0 }
 0x1f5   :  { %v449_v31 = vmax.f32 %v402_v25, 0.0 }
 0x1f6   :  { %v451_v32 = vpack.c.bf16 %v448_v28, %v445_v26  ;;  %v453_v33 = vpack.c.bf16 %v450_v29, %v447_v27 }
 0x1f7   :  { %v452_v35 = vpack.c.bf16 %v449_v31, %v446_v30 }
 0x1f8   :  { %863 = vmatmul.mubr.bf16.vlgmr.msra.gmra.mrb[8].mxu0 %v453_v33 }
 0x1f9   :  { %634 = vmatprep.mubr.bf16.mxu1 %v452_v35 }
 0x1fa   :  { %635 = vmatmul.mubr.bf16.vlgmr.msra.gmra.mrb[4].mxu1 %v451_v32 }
 0x2cb   :  { %v677_v38 = vpop.f32.mrb[8].mxu0 }
 0x2cc   :  { %v864_v39 = vpop.f32.mrb[9].mxu0 }
 0x2cd   :  { %v803_v40 = vpop.f32.mrb[4].mxu1  ;;  %v680_v41 = vpop.f32.mrb[10].mxu0 }
 0x2ce   :  { %v804_v43 = vpop.f32.mrb[5].mxu1  ;;  %v865_v44 = vpop.f32.mrb[11].mxu0 }
 0x2cf   :  { %v805_v45 = vadd.f32 %v804_v43, %v803_v40  ;;  %v806_v46 = vpop.f32.mrb[6].mxu1 }
 0x2d0   :  { %v807_v47 = vpop.f32.mrb[7].mxu1 }
 0x2d1   :  { %v637_v48 = vadd.f32 %v805_v45, %v457_v42  ;;  %v808_v49 = vadd.f32 %v807_v47, %v806_v46 }
 0x2d3   :  { %v678_v50 = vadd.f32 %v677_v38, %v637_v48  ;;  %v640_v51 = vadd.f32 %v808_v49, %v457_v42 }
 0x2d5   :  { %v681_v52 = vadd.f32 %v680_v41, %v640_v51  ;;  %936 = vtanh.f32 %v678_v50 }
 0x2d7   :  { %938 = vtanh.f32 %v681_v52 }
 0x2df   :  { %v937_v53 = vpop.eup %936 }
 0x2e1   :  { %v939_v54 = vpop.eup %938 }
 0x2e2   :  { %v773_v55 = vpack.c.bf16 %v939_v54, %v937_v53 }
 0x2e4   :  { %774 = vst [vmem:[#allocation8] sm:$0xff] %v773_v55  }
 0x2e5   :  { %1017 = shalt.err (!%p1014_p0)
}
 0x2e6   :  { %s1018_s29 = scalar_lea.hbm %s1163_s3, 128 }
 0x2e7   :  { %p1019_p1 = scmp.ne.s32.totalorder %s1163_s3, %s1018_s29  ;;  %p1022_p2 = scmp.lt.u32.totalorder %s1018_s29, %s1163_s3 }
 0x2e9   :  { %p1024_p3 = pnand %p1022_p2, %p1019_p1 }
 0x2eb   :  { %1027 = shalt.err (!%p1024_p3)
}
 0x2ec   :  { %707 = dma.vmem_to_hbm [thread:$0]  %s702_s23, 128, %s1163_s3, [#allocation4], %s1036_s24, %s1036_s24, %s1037_s25  }
 0x2ed   :  { %1032 = dma.done.wait [#allocation4], 128  }
 0x2ee   :  { %1033 = vsyncadd [#allocation4], 4294967168 }
 0x2ef   :  { %711 = vsyncpa [#allocation3], 1 }
 0x2f0   :  { %712 = vsyncpa [#allocation6], 1 }
 0x2f1   :  { %713 = vsyncpa [#allocation4], 1 }

</bundles_post_ra>
